<compile_context>
chip_gen: v7x
topology: tpu7x:2x2x1
jax: 0.10.0
libtpu: 0.0.40
codegen_flags: <defaults>
</compile_context>

<pallas_src>
import functools

import jax
import jax.numpy as jnp
from jax.experimental import pallas as pl
from jax.experimental.pallas import tpu as pltpu


def _round_up(x, m):
    return ((x + m - 1) // m) * m


def _dsdh_loss_kernel(n_valid, mask_cols,
                      scal_ref, cnn_ref, u_ref, s_ref, yt_ref, bt_ref, w_ref,
                      loss_ref, acc_ref):
    c = pl.program_id(0)                    # core / partial-sum index (parallel)
    k = pl.program_id(1)                    # n_samples tile index (arbitrary)
    kt = pl.num_programs(1)

    # ---- init accumulator at the start of this core's streamed loop --------
    @pl.when(k == 0)
    def _init():
        acc_ref[...] = jnp.zeros_like(acc_ref)

    # ---- streamed pairwise (negative log-likelihood) term ------------------
    theta = jnp.dot(cnn_ref[...].astype(jnp.float32),
                    u_ref[...].astype(jnp.float32),
                    preferred_element_type=jnp.float32) * 0.5
    theta = jnp.clip(theta, -100.0, 50.0)
    s = s_ref[...].astype(jnp.float32)
    # stable softplus(theta) - s * theta  (same EUP count as log(1+exp))
    contrib = (jnp.maximum(theta, 0.0)
               + jnp.log(1.0 + jnp.exp(-jnp.abs(theta)))
               - s * theta)

    if mask_cols:                            # static: only if we padded columns
        tn = theta.shape[-1]
        col = ((c * kt + k) * tn
               + jax.lax.broadcasted_iota(jnp.int32, theta.shape, 1))
        contrib = jnp.where(col < n_valid, contrib, 0.0)

    acc_ref[...] += contrib                  # VPU-only per-step accumulation

    # ---- finalize: one cross-lane reduce + small terms, once per core ------
    @pl.when(k == kt - 1)
    def _finalize():
        partial = jnp.sum(acc_ref[...])

        mu = scal_ref[0]
        nu = scal_ref[1]
        inv_numel = scal_ref[2]

        # classification term in transposed form:
        #   ||Y[:,idx] - W^T B[:,idx]||_F^2 == ||Y_idx^T - B_idx^T W||_F^2
        w32 = w_ref[...].astype(jnp.float32)
        pred_t = jnp.dot(bt_ref[...].astype(jnp.float32), w32,
                         preferred_element_type=jnp.float32)
        diff = yt_ref[...].astype(jnp.float32) - pred_t
        cl_loss = jnp.sum(diff * diff)
        reg_loss = jnp.sum(w32 * w32)

        # only partial-sum 0 carries the (small) cl / reg terms
        first = (c == 0).astype(jnp.float32)
        total = (partial + first * (mu * cl_loss + nu * reg_loss)) * inv_numel

        # lane-dense store; wrapper reads element [., 0, 0]
        loss_ref[...] = jnp.full(loss_ref.shape, total, dtype=loss_ref.dtype)


def dsdh_loss(S, outputs, U, B, W, Y, index, mu, nu, *, tile_n=2048):
    """Pallas implementation of DSDHLoss.forward. Returns a scalar f32."""
    batch, code_len = outputs.shape
    n_samples = U.shape[1]
    n_classes = W.shape[1]

    # glue: column gather + transpose so the kernel only does row-major matmuls
    # (tiny: batch x (code_len + n_classes) elements)
    y_t = jnp.take(Y, index, axis=1).T       # (batch, n_classes)
    b_t = jnp.take(B, index, axis=1).T       # (batch, code_len)

    # ---- tiling of the streamed n_samples axis ------------------------------
    tn = min(tile_n, _round_up(n_samples, 128))          # lane-aligned tile
    n_tiles = pl.cdiv(n_samples, tn)
    nc = 2 if n_tiles >= 2 else 1                        # 2 parallel partials (v7x megacore)
    n_pad = _round_up(n_samples, nc * tn)
    kt = n_pad // (nc * tn)                              # tiles per core

    if n_pad != n_samples:
        U = jnp.pad(U, ((0, 0), (0, n_pad - n_samples)))
        S = jnp.pad(S, ((0, 0), (0, n_pad - n_samples)))

    # SMEM scalars: mu, nu, 1/numel  (numel uses the ORIGINAL S shape)
    scal = jnp.array([mu, nu, 1.0 / float(batch * n_samples)], dtype=jnp.float32)

    kernel = functools.partial(_dsdh_loss_kernel, n_samples, n_pad != n_samples)
    smem = pltpu.MemorySpace.SMEM

    out = pl.pallas_call(
        kernel,
        out_shape=jax.ShapeDtypeStruct((nc, 8, 128), jnp.float32),
        grid_spec=pltpu.PrefetchScalarGridSpec(
            num_scalar_prefetch=0,
            grid=(nc, kt),
            in_specs=[
                pl.BlockSpec(memory_space=smem),                             # mu/nu/inv_numel
                pl.BlockSpec((batch, code_len), lambda c, k: (0, 0)),        # outputs (resident)
                pl.BlockSpec((code_len, tn), lambda c, k: (0, c * kt + k)),  # U tile (streamed)
                pl.BlockSpec((batch, tn), lambda c, k: (0, c * kt + k)),     # S tile (streamed)
                pl.BlockSpec((batch, n_classes), lambda c, k: (0, 0)),       # Y[:,idx]^T (resident)
                pl.BlockSpec((batch, code_len), lambda c, k: (0, 0)),        # B[:,idx]^T (resident)
                pl.BlockSpec((code_len, n_classes), lambda c, k: (0, 0)),    # W (resident)
            ],
            out_specs=pl.BlockSpec((1, 8, 128), lambda c, k: (c, 0, 0)),
            scratch_shapes=[pltpu.VMEM((batch, tn), jnp.float32)],           # deferred-reduce acc
        ),
        compiler_params=pltpu.CompilerParams(
            dimension_semantics=("parallel", "arbitrary")),
    )(scal, outputs, U, S, y_t, b_t, W)

    return jnp.sum(out[:, 0, 0])


def dsdh_loss_ref(S, outputs, U, B, W, Y, index, mu, nu):
    """Pure-JAX reference mirroring the PyTorch module exactly."""
    S = S.astype(jnp.float32)
    outputs = outputs.astype(jnp.float32)
    U = U.astype(jnp.float32)
    B = B.astype(jnp.float32)
    W = W.astype(jnp.float32)
    Y = Y.astype(jnp.float32)
    theta = outputs @ U / 2.0
    theta = jnp.clip(theta, -100.0, 50.0)
    loss = jnp.sum(jnp.log(1.0 + jnp.exp(theta)) - S * theta)
    cl_loss = jnp.sum((Y[:, index] - W.T @ B[:, index]) ** 2)
    reg_loss = jnp.sum(W ** 2)
    loss = loss + mu * cl_loss + nu * reg_loss
    return loss / (S.shape[0] * S.shape[1])


def _make_inputs(key, batch, code_len, n_samples, n_classes):
    k = jax.random.split(key, 6)
    outputs = jax.random.normal(k[0], (batch, code_len), jnp.float32)
    U = jax.random.normal(k[1], (code_len, n_samples), jnp.float32)
    # S holds 0/1 — store it in bf16 to halve streamed bytes, exact values.
    S = (jax.random.uniform(k[2], (batch, n_samples)) > 0.5).astype(jnp.bfloat16)
    B = jnp.sign(jax.random.normal(k[3], (code_len, n_samples), jnp.float32))
    B = jnp.where(B == 0, 1.0, B)
    W = 0.1 * jax.random.normal(k[4], (code_len, n_classes), jnp.float32)
    labels = jax.random.randint(k[5], (n_samples,), 0, n_classes)
    Y = jax.nn.one_hot(labels, n_classes, dtype=jnp.float32).T   # (n_classes, n_samples)
    index = jnp.arange(batch, dtype=jnp.int32)
    return S, outputs, U, B, W, Y, index


if __name__ == "__main__":
    key = jax.random.PRNGKey(0)
    k1, k2 = jax.random.split(key)

    # Test 1: small shapes (single core, single tile, column masking).
    args1 = _make_inputs(k1, batch=8, code_len=16, n_samples=32, n_classes=8)
    mu1, nu1 = 1e-2, 1.0
    out1 = jax.block_until_ready(dsdh_loss(*args1, mu1, nu1))
    ref1 = dsdh_loss_ref(*args1, mu1, nu1)
    assert jnp.allclose(out1, ref1, rtol=1e-4, atol=1e-5), (out1, ref1)

    # Test 2: larger shapes (2 parallel partial sums, 2 tiles/core, padding+mask).
    args2 = _make_inputs(k2, batch=16, code_len=32, n_samples=5000, n_classes=12)
    mu2, nu2 = 0.1, 0.5
    out2 = jax.block_until_ready(dsdh_loss(*args2, mu2, nu2))
    ref2 = dsdh_loss_ref(*args2, mu2, nu2)
    assert jnp.allclose(out2, ref2, rtol=1e-4, atol=1e-5), (out2, ref2)

    print("KERNEL_OK")
</pallas_src>

<mosaic_0001>
module attributes {stable_mosaic.version = 11 : i64} {
  func.func @_dsdh_loss_kernel(%arg0: i32, %arg1: i32, %arg2: memref<3xf32, #tpu.memory_space<smem>>, %arg3: memref<8x16xf32, #tpu.memory_space<vmem>>, %arg4: memref<16x128xf32, #tpu.memory_space<vmem>>, %arg5: memref<8x128xbf16, #tpu.memory_space<vmem>>, %arg6: memref<8x8xf32, #tpu.memory_space<vmem>>, %arg7: memref<8x16xf32, #tpu.memory_space<vmem>>, %arg8: memref<16x8xf32, #tpu.memory_space<vmem>>, %arg9: memref<1x8x128xf32, #tpu.memory_space<vmem>>, %arg10: memref<8x128xf32, #tpu.memory_space<vmem>>) attributes {dimension_semantics = [#tpu.dimension_semantics<parallel>, #tpu.dimension_semantics<arbitrary>], iteration_bounds = array<i64: 1, 1>, scalar_prefetch = 0 : i64, scratch_operands = 1 : i64, tpu.core_type = #tpu.core_type<tc>, window_params = [{transform_indices = @transform_0, window_bounds = array<i64: 3>}, {pipeline_mode = #tpu.pipeline_mode<synchronous>, transform_indices = @transform_1, window_bounds = array<i64: 8, 16>}, {transform_indices = @transform_2, window_bounds = array<i64: 16, 128>}, {transform_indices = @transform_3, window_bounds = array<i64: 8, 128>}, {pipeline_mode = #tpu.pipeline_mode<synchronous>, transform_indices = @transform_4, window_bounds = array<i64: 8, 8>}, {pipeline_mode = #tpu.pipeline_mode<synchronous>, transform_indices = @transform_5, window_bounds = array<i64: 8, 16>}, {pipeline_mode = #tpu.pipeline_mode<synchronous>, transform_indices = @transform_6, window_bounds = array<i64: 16, 8>}, {transform_indices = @transform_7, window_bounds = array<i64: 1, 8, 128>}]} {
    %c0_i32 = arith.constant 0 : i32
    %0 = arith.cmpi eq, %arg1, %c0_i32 : i32
    %1 = arith.extui %0 : i1 to i32
    %c0_i32_0 = arith.constant 0 : i32
    %2 = arith.cmpi ne, %1, %c0_i32_0 : i32
    scf.if %2 {
      %cst_19 = arith.constant 0.000000e+00 : f32
      %42 = vector.broadcast %cst_19 : f32 to vector<8x128xf32>
      %c0_20 = arith.constant 0 : index
      %c0_21 = arith.constant 0 : index
      %43 = vector.load %arg10[%c0_20, %c0_21] : memref<8x128xf32, #tpu.memory_space<vmem>>, vector<8x128xf32>
      tpu.vector_store %arg10[%c0_20, %c0_21], %42 {strides = array<i32>} : memref<8x128xf32, #tpu.memory_space<vmem>>, vector<8x128xf32>,
    } else {
    }
    %c0 = arith.constant 0 : index
    %c0_1 = arith.constant 0 : index
    %3 = vector.load %arg3[%c0, %c0_1] : memref<8x16xf32, #tpu.memory_space<vmem>>, vector<8x16xf32>
    %c0_2 = arith.constant 0 : index
    %c0_3 = arith.constant 0 : index
    %4 = vector.load %arg4[%c0_2, %c0_3] : memref<16x128xf32, #tpu.memory_space<vmem>>, vector<16x128xf32>
    %cst = arith.constant dense<0.000000e+00> : vector<8x128xf32>
    %5 = tpu.matmul %3, %4, %cst {dimension_numbers = #tpu.dot_dimension_numbers<[1], [0], [0], [1], [0, 0, 1, 1], [], []>} : vector<8x16xf32>, vector<16x128xf32>, vector<8x128xf32> -> vector<8x128xf32>
    %cst_4 = arith.constant 5.000000e-01 : f32
    %6 = vector.broadcast %cst_4 : f32 to vector<8x128xf32>
    %7 = arith.mulf %5, %6 : vector<8x128xf32>
    %cst_5 = arith.constant -1.000000e+02 : f32
    %cst_6 = arith.constant 5.000000e+01 : f32
    %8 = vector.broadcast %cst_5 : f32 to vector<8x128xf32>
    %9 = arith.maximumf %8, %7 : vector<8x128xf32>
    %10 = vector.broadcast %cst_6 : f32 to vector<8x128xf32>
    %11 = arith.minimumf %10, %9 : vector<8x128xf32>
    %c0_7 = arith.constant 0 : index
    %c0_8 = arith.constant 0 : index
    %12 = vector.load %arg5[%c0_7, %c0_8] : memref<8x128xbf16, #tpu.memory_space<vmem>>, vector<8x128xbf16>
    %13 = arith.extf %12 : vector<8x128xbf16> to vector<8x128xf32>
    %cst_9 = arith.constant 0.000000e+00 : f32
    %14 = vector.broadcast %cst_9 : f32 to vector<8x128xf32>
    %15 = arith.maximumf %11, %14 : vector<8x128xf32>
    %16 = math.absf %11 : vector<8x128xf32>
    %cst_10 = arith.constant 0.000000e+00 : f32
    %17 = vector.broadcast %cst_10 : f32 to vector<8x128xf32>
    %18 = arith.subf %17, %16 : vector<8x128xf32>
    %19 = math.exp %18 : vector<8x128xf32>
    %cst_11 = arith.constant 1.000000e+00 : f32
    %20 = vector.broadcast %cst_11 : f32 to vector<8x128xf32>
    %21 = arith.addf %20, %19 : vector<8x128xf32>
    %22 = math.log %21 : vector<8x128xf32>
    %23 = arith.addf %15, %22 : vector<8x128xf32>
    %24 = arith.mulf %13, %11 : vector<8x128xf32>
    %25 = arith.subf %23, %24 : vector<8x128xf32>
    %c1_i32 = arith.constant 1 : i32
    %26 = arith.muli %arg0, %c1_i32 : i32
    %27 = arith.addi %26, %arg1 : i32
    %c128_i32 = arith.constant 128 : i32
    %28 = arith.muli %27, %c128_i32 : i32
    %29 = tpu.iota {dimensions = array<i32: 1>} : vector<8x128xi32>
    %30 = vector.broadcast %28 : i32 to vector<8x128xi32>
    %31 = arith.addi %30, %29 : vector<8x128xi32>
    %c32_i32 = arith.constant 32 : i32
    %32 = vector.broadcast %c32_i32 : i32 to vector<8x128xi32>
    %33 = arith.cmpi slt, %31, %32 : vector<8x128xi32>
    %cst_12 = arith.constant 0.000000e+00 : f32
    %34 = vector.broadcast %cst_12 : f32 to vector<8x128xf32>
    %35 = arith.select %33, %25, %34 : vector<8x128xi1>, vector<8x128xf32>
    %c0_13 = arith.constant 0 : index
    %c0_14 = arith.constant 0 : index
    %36 = vector.load %arg10[%c0_13, %c0_14] : memref<8x128xf32, #tpu.memory_space<vmem>>, vector<8x128xf32>
    %37 = arith.addf %36, %35 : vector<8x128xf32>
    %c0_15 = arith.constant 0 : index
    %c0_16 = arith.constant 0 : index
    %38 = vector.load %arg10[%c0_15, %c0_16] : memref<8x128xf32, #tpu.memory_space<vmem>>, vector<8x128xf32>
    tpu.vector_store %arg10[%c0_15, %c0_16], %37 {strides = array<i32>} : memref<8x128xf32, #tpu.memory_space<vmem>>, vector<8x128xf32>,
    %c0_i32_17 = arith.constant 0 : i32
    %39 = arith.cmpi eq, %arg1, %c0_i32_17 : i32
    %40 = arith.extui %39 : i1 to i32
    %c0_i32_18 = arith.constant 0 : i32
    %41 = arith.cmpi ne, %40, %c0_i32_18 : i32
    scf.if %41 {
      %c0_19 = arith.constant 0 : index
      %c0_20 = arith.constant 0 : index
      %42 = vector.load %arg10[%c0_19, %c0_20] : memref<8x128xf32, #tpu.memory_space<vmem>>, vector<8x128xf32>
      %43 = vector.shape_cast %42 : vector<8x128xf32> to vector<1x8x128xf32>
      %cst_21 = arith.constant dense<0.000000e+00> : vector<1xf32>
      %44 = vector.multi_reduction <add>, %43, %cst_21 [1, 2] : vector<1x8x128xf32> to vector<1xf32>
      %45 = vector.shape_cast %44 : vector<1xf32> to vector<1x1x1xf32>
      %46 = vector.extract %45[0, 0, 0] : f32 from vector<1x1x1xf32>
      %c0_22 = arith.constant 0 : index
      %47 = memref.load %arg2[%c0_22] : memref<3xf32, #tpu.memory_space<smem>>
      %c1 = arith.constant 1 : index
      %48 = memref.load %arg2[%c1] : memref<3xf32, #tpu.memory_space<smem>>
      %c2 = arith.constant 2 : index
      %49 = memref.load %arg2[%c2] : memref<3xf32, #tpu.memory_space<smem>>
      %c0_23 = arith.constant 0 : index
      %c0_24 = arith.constant 0 : index
      %50 = vector.load %arg8[%c0_23, %c0_24] : memref<16x8xf32, #tpu.memory_space<vmem>>, vector<16x8xf32>
      %c0_25 = arith.constant 0 : index
      %c0_26 = arith.constant 0 : index
      %51 = vector.load %arg7[%c0_25, %c0_26] : memref<8x16xf32, #tpu.memory_space<vmem>>, vector<8x16xf32>
      %cst_27 = arith.constant dense<0.000000e+00> : vector<8x8xf32>
      %52 = tpu.matmul %51, %50, %cst_27 {dimension_numbers = #tpu.dot_dimension_numbers<[1], [0], [0], [1], [0, 0, 1, 1], [], []>} : vector<8x16xf32>, vector<16x8xf32>, vector<8x8xf32> -> vector<8x8xf32>
      %c0_28 = arith.constant 0 : index
      %c0_29 = arith.constant 0 : index
      %53 = vector.load %arg6[%c0_28, %c0_29] : memref<8x8xf32, #tpu.memory_space<vmem>>, vector<8x8xf32>
      %54 = arith.subf %53, %52 : vector<8x8xf32>
      %55 = arith.mulf %54, %54 : vector<8x8xf32>
      %56 = vector.shape_cast %55 : vector<8x8xf32> to vector<1x8x8xf32>
      %cst_30 = arith.constant dense<0.000000e+00> : vector<1xf32>
      %57 = vector.multi_reduction <add>, %56, %cst_30 [1, 2] : vector<1x8x8xf32> to vector<1xf32>
      %58 = vector.shape_cast %57 : vector<1xf32> to vector<1x1x1xf32>
      %59 = vector.extract %58[0, 0, 0] : f32 from vector<1x1x1xf32>
      %60 = arith.mulf %50, %50 : vector<16x8xf32>
      %61 = vector.shape_cast %60 : vector<16x8xf32> to vector<1x16x8xf32>
      %cst_31 = arith.constant dense<0.000000e+00> : vector<1xf32>
      %62 = vector.multi_reduction <add>, %61, %cst_31 [1, 2] : vector<1x16x8xf32> to vector<1xf32>
      %63 = vector.shape_cast %62 : vector<1xf32> to vector<1x1x1xf32>
      %64 = vector.extract %63[0, 0, 0] : f32 from vector<1x1x1xf32>
      %c0_i32_32 = arith.constant 0 : i32
      %65 = arith.cmpi eq, %arg0, %c0_i32_32 : i32
      %66 = arith.extui %65 : i1 to i32
      %67 = arith.sitofp %66 : i32 to f32
      %68 = arith.mulf %47, %59 : f32
      %69 = arith.mulf %48, %64 : f32
      %70 = arith.addf %68, %69 : f32
      %71 = arith.mulf %67, %70 : f32
      %72 = arith.addf %46, %71 : f32
      %73 = arith.mulf %72, %49 : f32
      %74 = vector.broadcast %73 : f32 to vector<1x8x128xf32>
      %c0_33 = arith.constant 0 : index
      %c0_34 = arith.constant 0 : index
      %c0_35 = arith.constant 0 : index
      %75 = vector.load %arg9[%c0_33, %c0_34, %c0_35] : memref<1x8x128xf32, #tpu.memory_space<vmem>>, vector<1x8x128xf32>
      tpu.vector_store %arg9[%c0_33, %c0_34, %c0_35], %74 {strides = array<i32>} : memref<1x8x128xf32, #tpu.memory_space<vmem>>, vector<1x8x128xf32>,
    } else {
    }
    return
  }
  func.func @transform_0(%arg0: i32, %arg1: i32) -> i32 {
    %c0_i32 = arith.constant 0 : i32
    %c0_i32_0 = arith.constant 0 : i32
    return %c0_i32 : i32
  }
  func.func @transform_1(%arg0: i32, %arg1: i32) -> (i32, i32) {
    %c0_i32 = arith.constant 0 : i32
    %c0_i32_0 = arith.constant 0 : i32
    %c0_i32_1 = arith.constant 0 : i32
    return %c0_i32, %c0_i32_0 : i32, i32
  }
  func.func @transform_2(%arg0: i32, %arg1: i32) -> (i32, i32) {
    %c1_i32 = arith.constant 1 : i32
    %0 = arith.muli %arg0, %c1_i32 : i32
    %1 = arith.addi %0, %arg1 : i32
    %c0_i32 = arith.constant 0 : i32
    %c0_i32_0 = arith.constant 0 : i32
    return %c0_i32, %1 : i32, i32
  }
  func.func @transform_3(%arg0: i32, %arg1: i32) -> (i32, i32) {
    %c1_i32 = arith.constant 1 : i32
    %0 = arith.muli %arg0, %c1_i32 : i32
    %1 = arith.addi %0, %arg1 : i32
    %c0_i32 = arith.constant 0 : i32
    %c0_i32_0 = arith.constant 0 : i32
    return %c0_i32, %1 : i32, i32
  }
  func.func @transform_4(%arg0: i32, %arg1: i32) -> (i32, i32) {
    %c0_i32 = arith.constant 0 : i32
    %c0_i32_0 = arith.constant 0 : i32
    %c0_i32_1 = arith.constant 0 : i32
    return %c0_i32, %c0_i32_0 : i32, i32
  }
  func.func @transform_5(%arg0: i32, %arg1: i32) -> (i32, i32) {
    %c0_i32 = arith.constant 0 : i32
    %c0_i32_0 = arith.constant 0 : i32
    %c0_i32_1 = arith.constant 0 : i32
    return %c0_i32, %c0_i32_0 : i32, i32
  }
  func.func @transform_6(%arg0: i32, %arg1: i32) -> (i32, i32) {
    %c0_i32 = arith.constant 0 : i32
    %c0_i32_0 = arith.constant 0 : i32
    %c0_i32_1 = arith.constant 0 : i32
    return %c0_i32, %c0_i32_0 : i32, i32
  }
  func.func @transform_7(%arg0: i32, %arg1: i32) -> (i32, i32, i32) {
    %c0_i32 = arith.constant 0 : i32
    %c0_i32_0 = arith.constant 0 : i32
    %c0_i32_1 = arith.constant 0 : i32
    return %arg0, %c0_i32, %c0_i32_0 : i32, i32, i32
  }
}

</mosaic_0001>

<bundles_post_ra>
// kernel: tpu_custom_call.1
= control target key start
LH: loop header
LB: loop body
LE: loop exit
PB: predicated region body
PF: predicated region fallthrough
CT: control target
= control target key end

     0   :  { %12 = vsyncpa [#allocation6], 0  ;;  %s588_s0 = inlined_call_operand.vmem [shape: f32[3], index: 0, kind: input, shape index: {}]   ;;  %s589_s1 = inlined_call_operand.vmem [shape: f32[8,16], index: 1, kind: input, shape index: {}]   ;;  %s590_s2 = inlined_call_operand.vmem [shape: f32[16,128], index: 2, kind: input, shape index: {}]   ;;  %s591_s3 = inlined_call_operand.hbm [shape: bf16[8,128], index: 3, kind: input, shape index: {}]   ;;  %s592_s4 = inlined_call_operand.hbm [shape: f32[8,8], index: 4, kind: input, shape index: {}]   ;;  %s593_s5 = inlined_call_operand.vmem [shape: f32[8,16], index: 5, kind: input, shape index: {}]   ;;  %s594_s6 = inlined_call_operand.vmem [shape: f32[16,8], index: 6, kind: input, shape index: {}]   ;;  %s595_s7 = inlined_call_operand.hbm [shape: f32[1,8,128], index: 7, kind: output, shape index: {}]  }
   0x1   :  { %13 = vsyncpa [#allocation4], 0 }
   0x2   :  { %14 = vsyncpa [#allocation9], 0 }
   0x3   :  { %15 = vsyncpa [#allocation5], 0  ;;  %s22_s26 = sshll.u32 %s588_s0, 4  ;;  %s23_s26 = int_to_ptr.vmem [resolvable:$true] %s22_s26 }
   0x4   :  { %s395_s27 = scalar_lea.vmem %s23_s26, 16  ;;  %p400_p1 = scmp.lt.s32.totalorder %s23_s26, %s23_s26 }
   0x5   :  { %p396_p0 = scmp.ne.s32.totalorder %s23_s26, %s395_s27  ;;  %p401_p2 = scmp.lt.s32.totalorder %s395_s27, %s395_s27 }
   0x7   :  { %p402_p3 = por %p401_p2, %p400_p1 }
   0x9   :  { %p403_p4 = pnand %p402_p3, %p396_p0 }
   0xb   :  { %406 = shalt.err (!%p403_p4)
}
   0xc   :  { %s481_s28 = smov [#allocation3]   ;;  %s482_s29 = smov [#allocation7]  }
   0xd   :  { %25 = dma.vmem_to_smem %s23_s26, 16, %s481_s28, [#allocation6]  }
   0xe   :  { %s45_s30 = sshll.u32 %s482_s29, 4  ;;  %s483_s8 = smov [#allocation8]   ;;  %s46_s30 = int_to_ptr.vmem [resolvable:$true] %s45_s30 }
   0xf   :  { %s55_s9 = sshll.u32 %s483_s8, 4  ;;  %s407_s12 = scalar_lea.hbm %s591_s3, 64  ;;  %s56_s9 = int_to_ptr.vmem [resolvable:$true] %s55_s9 }
  0x10   :  { %p408_p5 = scmp.ne.s32.totalorder %s591_s3, %s407_s12  ;;  %p411_p6 = scmp.lt.u32.totalorder %s407_s12, %s591_s3 }
  0x12   :  { %p413_p7 = pnand %p411_p6, %p408_p5 }
  0x14   :  { %416 = shalt.err (!%p413_p7)
}
  0x15   :  { %s417_s16 = scalar_lea.vmem %s46_s30, 64  ;;  %p422_p9 = scmp.lt.s32.totalorder %s46_s30, %s46_s30 }
  0x16   :  { %p418_p8 = scmp.ne.s32.totalorder %s46_s30, %s417_s16  ;;  %p423_p10 = scmp.lt.s32.totalorder %s417_s16, %s417_s16 }
  0x18   :  { %p424_p11 = por %p423_p10, %p422_p9 }
  0x1a   :  { %p425_p12 = pnand %p424_p11, %p418_p8 }
  0x1c   :  { %428 = shalt.err (!%p425_p12)
}
  0x1d   :  { %48 = dma.hbm_to_vmem [thread:$0]  %s591_s3, 64, %s46_s30, [#allocation4]  }
  0x1e   :  { %s429_s21 = scalar_lea.hbm %s592_s4, 128 }
  0x1f   :  { %p430_p13 = scmp.ne.s32.totalorder %s592_s4, %s429_s21  ;;  %p433_p0 = scmp.lt.u32.totalorder %s429_s21, %s592_s4 }
  0x21   :  { %p435_p1 = pnand %p433_p0, %p430_p13 }
  0x23   :  { %438 = shalt.err (!%p435_p1)
}
  0x24   :  { %s439_s26 = scalar_lea.vmem %s56_s9, 128  ;;  %p444_p3 = scmp.lt.s32.totalorder %s56_s9, %s56_s9 }
  0x25   :  { %p440_p2 = scmp.ne.s32.totalorder %s56_s9, %s439_s26  ;;  %p445_p4 = scmp.lt.s32.totalorder %s439_s26, %s439_s26 }
  0x27   :  { %p446_p5 = por %p445_p4, %p444_p3 }
  0x29   :  { %p447_p6 = pnand %p446_p5, %p440_p2 }
  0x2b   :  { %450 = shalt.err (!%p447_p6)
}
  0x2c   :  { %58 = dma.hbm_to_vmem [thread:$0]  %s592_s4, 128, %s56_s9, [#allocation9]  }
  0x2d   :  { %473 = dma.done.wait [#allocation6], 16  }
  0x2e   :  { %474 = vsyncadd [#allocation6], 4294967280 }
  0x2f   :  { %475 = dma.done.wait [#allocation4], 64  }
  0x30   :  { %476 = vsyncadd [#allocation4], 4294967232 }
  0x31   :  { %477 = dma.done.wait [#allocation9], 128  }
  0x32   :  { %478 = vsyncadd [#allocation9], 4294967168 }
  0x33   :  { %72 = sfence }
  0x34   :  { %v91_v0 = vld [vmem:[%s590_s2] sm:$0xff]  ;;  %v92_v1 = vld [vmem:[%s590_s2 + $0x8] sm:$0xff]  ;;  %v484_v2 = vmov 0.0|0.0   ;;  %vm485_vm0 = vmmov 0   ;;  %v486_v4 = vmov 0.0   ;;  %vm93_vm1 = vcmask 130048  }
  0x35   :  { %372 = vmatprep.subr.bf16.mxu0 %v484_v2  ;;  %v373_v3 = vpack.c.bf16 %v92_v1, %v91_v0  ;;  %362 = vmatprep.mubr.msk.f32.mxu0 %vm485_vm0, %v486_v4  ;;  %v210_v5 = vld [vmem:[%s594_s6] sm:$0xff]  ;;  %v211_v6 = vld [vmem:[%s594_s6 + $0x8] sm:$0xff]  ;;  %vm289_vm2 = vcmask 64512   ;;  %v185_v28 = vlaneseq  ;;  %s350_s15 = sld [smem:[#allocation3 + $0x2]]  ;;  %s487_s21 = smov [#allocation10]  }
  0x36   :  { %375 = vmatprep.subr.bf16.mxu1 %v484_v2  ;;  %v376_v7 = vpack.c.bf16 %v211_v6, %v210_v5  ;;  %369 = vmatprep.mubr.msk.f32.mxu1 %vm485_vm0, %v486_v4  ;;  %v90_v8 = vld [vmem:[%s589_s1] sm:$0xff]  ;;  %v300_v10 = vmul.f32 %v210_v5, %v210_v5  ;;  %v301_v11 = vmul.f32 %v211_v6, %v211_v6  ;;  %s207_s1 = sld [smem:[#allocation3]]  ;;  %s331_s22 = sshll.u32 %s487_s21, 4  ;;  %s332_s22 = int_to_ptr.vmem [resolvable:$true] %s331_s22 }
  0x37   :  { %374 = vmatpush3.bf16.msra.mxu0 %v373_v3  ;;  %v212_v9 = vld [vmem:[%s593_s5] sm:$0xff]  ;;  %v186_v32 = vand.u32 127, %v185_v28  ;;  %s349_s5 = sld [smem:[#allocation3 + $0x1]]  ;;  %s451_s24 = scalar_lea.vmem %s332_s22, 128 }
  0x38   :  { %377 = vmatpush3.bf16.msra.mxu1 %v376_v7  ;;  %v302_v12 = vsel %vm289_vm2, %v300_v10, 0.0  ;;  %v303_v13 = vsel %vm289_vm2, %v301_v11, 0.0  ;;  %v170_v27 = vld [vmem:[#allocation7] sm:$0xf]  ;;  %v286_v29 = vld [vmem:[#allocation8] sm:$0xff]  ;;  %p452_p7 = scmp.ne.s32.totalorder %s332_s22, %s451_s24  ;;  %p456_p8 = scmp.lt.s32.totalorder %s332_s22, %s332_s22 }
  0x39   :  { %v304_v14 = vadd.f32 %v303_v13, %v302_v12  ;;  %v171_v30 = vunpack.c.l.bf16 %v170_v27  ;;  %vm189_vm3 = vcmp.lt.s32.totalorder %v186_v32, 32  ;;  %p457_p9 = scmp.lt.s32.totalorder %s451_s24, %s451_s24 }
  0x3a   :  { %363 = vmatmul.mubr.msk.f32.vlgmr.msra.gmra.mrb[0].mxu0 %vm93_vm1, %v90_v8 }
  0x3b   :  { %370 = vmatmul.mubr.msk.f32.vlgmr.msra.gmra.mrb[0].mxu1 %vm93_vm1, %v212_v9  ;;  %305 = vadd.xlane.f32.xlu1 %v304_v14  ;;  %p458_p10 = por %p457_p9, %p456_p8 }
  0x3d   :  { %p459_p11 = pnand %p458_p10, %p452_p7 }
  0xc8   :  { %v306_v42 = vpop.xlane.xlu1 %305 }
  0xc9   :  { %v307_v43 = vrot.slane %v306_v42, 4 }
  0xcb   :  { %v308_v44 = vadd.f32 %v307_v43, %v306_v42 }
  0xcd   :  { %v309_v48 = vrot.slane %v308_v44, 2 }
  0xcf   :  { %v310_v54 = vadd.f32 %v309_v48, %v308_v44 }
  0xd1   :  { %v311_v59 = vrot.slane %v310_v54, 1 }
  0xd3   :  { %v312_v62 = vadd.f32 %v311_v59, %v310_v54 }
 0x10d   :  { %v163_v15 = vpop.f32.mrb[0].mxu0 }
 0x10e   :  { %v167_v16 = vmul.f32 0.5, %v163_v15  ;;  %v364_v17 = vpop.f32.mrb[1].mxu0  ;;  %v282_v18 = vpop.f32.mrb[0].mxu1 }
 0x10f   :  { %v371_v19 = vpop.f32.mrb[1].mxu1  ;;  %v287_v33 = vsub.f32 %v286_v29, %v282_v18 }
 0x110   :  { %v168_v20 = vmax.f32 %v167_v16, -100.0 }
 0x111   :  { %v288_v38 = vmul.f32 %v287_v33, %v287_v33 }
 0x112   :  { %v169_v21 = vmin.f32 %v168_v20, 50.0 }
 0x113   :  { %v290_v41 = vsel %vm289_vm2, %v288_v38, 0.0 }
 0x114   :  { %v173_v22 = vand.u32 2147483647, %v169_v21  ;;  %v172_v34 = vmax.f32 %v169_v21, 0.0  ;;  %v181_v37 = vmul.f32 %v171_v30, %v169_v21 }
 0x116   :  { %v174_v23 = vsub.f32 0.0, %v173_v22 }
 0x118   :  { %v175_v24 = vmul.f32 1.442695, %v174_v23 }
 0x11a   :  { %391 = vpow2.f32 %v175_v24 }
 0x124   :  { %v392_v25 = vpop.eup %391 }
 0x125   :  { %v177_v26 = vadd.f32 1.0, %v392_v25 }
 0x127   :  { %393 = vlog2.f32 %v177_v26 }
 0x131   :  { %v394_v31 = vpop.eup %393 }
 0x132   :  { %v179_v35 = vmul.f32 0.6931472, %v394_v31 }
 0x134   :  { %v180_v36 = vadd.f32 %v179_v35, %v172_v34 }
 0x136   :  { %v182_v39 = vsub.f32 %v180_v36, %v181_v37 }
 0x138   :  { %v190_v40 = vsel %vm189_vm3, %v182_v39, 0.0 }
 0x139   :  { %198 = vadd.xlane.f32.xlu0 %v190_v40 }
 0x13d   :  { %291 = vadd.xlane.f32.xlu0 %v290_v41 }
 0x1c6   :  { %v199_v45 = vpop.xlane.xlu0 %198 }
 0x1c7   :  { %v200_v46 = vrot.slane %v199_v45, 4 }
 0x1c9   :  { %v201_v47 = vadd.f32 %v200_v46, %v199_v45 }
 0x1ca   :  { %v292_v49 = vpop.xlane.xlu0 %291 }
 0x1cb   :  { %v202_v50 = vrot.slane %v201_v47, 2  ;;  %v293_v51 = vrot.slane %v292_v49, 4 }
 0x1cd   :  { %v294_v52 = vadd.f32 %v293_v51, %v292_v49  ;;  %v203_v53 = vadd.f32 %v202_v50, %v201_v47 }
 0x1cf   :  { %v295_v55 = vrot.slane %v294_v52, 2  ;;  %v204_v56 = vrot.slane %v203_v53, 1 }
 0x1d1   :  { %v296_v57 = vadd.f32 %v295_v55, %v294_v52  ;;  %v205_v58 = vadd.f32 %v204_v56, %v203_v53 }
 0x1d3   :  { %378 = vpush %v205_v58  ;;  %v297_v60 = vrot.slane %v296_v57, 1 }
 0x1d5   :  { %v298_v61 = vadd.f32 %v297_v60, %v296_v57 }
 0x1d7   :  { %380 = vpush %v298_v61 }
 0x1d8   :  { %382 = vpush %v312_v62 }
 0x204   :  { %s379_s6 = spop %378 }
 0x208   :  { %s381_s14 = spop %380 }
 0x209   :  { %s317_s16 = smul.f32 %s381_s14, %s207_s1  ;;  %s383_s17 = spop %382 }
 0x20a   :  { %s318_s18 = smul.f32 %s383_s17, %s349_s5 }
 0x20c   :  { %s319_s19 = sadd.f32 %s318_s18, %s317_s16 }
 0x20e   :  { %s321_s20 = sadd.f32 %s379_s6, %s319_s19 }
 0x210   :  { %s322_s23 = smul.f32 %s350_s15, %s321_s20 }
 0x212   :  { %v323_v63 = vstv %s322_s23 }
 0x213   :  { %324 = vst [vmem:[#allocation10] sm:$0xff] %v323_v63 }
 0x214   :  { %462 = shalt.err (!%p459_p11)
}
 0x215   :  { %s463_s3 = scalar_lea.hbm %s595_s7, 128 }
 0x216   :  { %p464_p12 = scmp.ne.s32.totalorder %s595_s7, %s463_s3  ;;  %p467_p13 = scmp.lt.u32.totalorder %s463_s3, %s595_s7 }
 0x218   :  { %p469_p0 = pnand %p467_p13, %p464_p12 }
 0x21a   :  { %472 = shalt.err (!%p469_p0)
}
 0x21b   :  { %334 = dma.vmem_to_hbm [thread:$0]  %s332_s22, 128, %s595_s7, [#allocation5]  }
 0x21c   :  { %479 = dma.done.wait [#allocation5], 128  }
 0x21d   :  { %480 = vsyncadd [#allocation5], 4294967168 }
 0x21e   :  { %338 = vsyncpa [#allocation4], 1 }
 0x21f   :  { %339 = vsyncpa [#allocation9], 1 }
 0x220   :  { %340 = vsyncpa [#allocation5], 1 }
 0x221   :  { %341 = vsyncpa [#allocation6], 1 }

</bundles_post_ra>
